<compile_context>
chip_gen: v7x
topology: tpu7x:2x2x1
jax: 0.10.0
libtpu: 0.0.40
codegen_flags: <defaults>
</compile_context>

<pallas_src>
import functools

import jax
import jax.numpy as jnp
from jax.experimental import pallas as pl
from jax.experimental.pallas import tpu as pltpu


EPS = 1e-5
_LANE = 128


def _norm_kernel(x_ref, w_ref, b_ref, o_ref, *, seq_len, eps, affine, reduce_axis):
    # Layout A: x_ref (bb, T, tc), reduce_axis=1, w/b (1, 1, tc)
    # Layout B: x_ref (bb, C, T),  reduce_axis=2, w/b (1, C, 1)
    x = x_ref[...].astype(jnp.float32)
    mean = jnp.mean(x, axis=reduce_axis, keepdims=True)
    xc = x - mean                                            # centered, reused
    # torch.std default is unbiased (divides by N-1)
    var = jnp.sum(xc * xc, axis=reduce_axis, keepdims=True) * (1.0 / (seq_len - 1))
    inv = pl.reciprocal(jnp.sqrt(var) + eps, approx=False)   # per-channel only
    if affine:
        w = w_ref[...].astype(jnp.float32)
        b = b_ref[...].astype(jnp.float32)
        # Fold weight into the per-channel scale: one full-tile FMA instead of
        # two multiplies + add, and one fewer full-tile f32 temporary.
        y = xc * (inv * w) + b
    else:
        y = xc * inv
    o_ref[...] = y.astype(o_ref.dtype)


def _denorm_kernel(x_ref, w_ref, b_ref, o_ref, *, seq_len, eps, affine, reduce_axis):
    x = x_ref[...].astype(jnp.float32)
    if affine:
        w = w_ref[...].astype(jnp.float32)
        b = b_ref[...].astype(jnp.float32)
        inv_w = pl.reciprocal(w + eps * eps, approx=False)   # C values only
        x = (x - b) * inv_w
    # NOTE: matches the reference PyTorch module exactly: this RevIN variant
    # recomputes mean/std from its own (de-affined) input in denorm; it does
    # NOT cache statistics from the `norm` call.
    mean = jnp.mean(x, axis=reduce_axis, keepdims=True)
    xc = x - mean
    var = jnp.sum(xc * xc, axis=reduce_axis, keepdims=True) * (1.0 / (seq_len - 1))
    std = jnp.sqrt(var)
    o_ref[...] = (x * std + mean).astype(o_ref.dtype)


def _largest_divisor_leq(n, cap):
    cap = max(1, min(n, cap))
    for d in range(cap, 0, -1):
        if n % d == 0:
            return d
    return 1


def _vmem_limit_bytes():
    # Derive from the actual chip (64 MiB/TC on v7x, 128 MiB on v5e/v6e);
    # conservative fallback if the query is unavailable.
    cap = 64 * 1024 * 1024
    try:
        cap = int(pltpu.get_tpu_info().vmem_capacity_bytes)
    except Exception:
        pass
    # Leave headroom for Mosaic's internal scratch.
    return (cap * 3) // 4


def _block_budget_bytes(vmem_limit, itemsize):
    # Per grid step VMEM usage ~= 2*(in + out) double buffers (HBM dtype)
    # + ~3 full-tile f32 temporaries (x_f32, xc, y):
    #   usage ~= elems * (4*itemsize + 12)  <=  0.8 * vmem_limit
    elems = int(0.8 * vmem_limit) // (4 * itemsize + 12)
    budget = max(itemsize, elems * itemsize)
    return min(budget, 16 * 1024 * 1024)   # keep the pipeline granular


def _choose_channel_tile(T, C, itemsize, block_budget):
    # Precondition: C % 128 == 0. Prefer the full, contiguous C row (fewest
    # DMA descriptors, no strided 512 B rows); only tile channels when a
    # single (1, T, C) row would not fit the block budget.
    if T * C * itemsize <= block_budget:
        return C
    d = C // _LANE
    for k in range(d, 0, -1):
        if d % k == 0 and T * (k * _LANE) * itemsize <= block_budget:
            return k * _LANE
    return _LANE   # caller asserts the long-T case


def revin(x, weight=None, bias=None, mode="norm", *, eps=EPS, affine=True):
    """x: (B, T, C); weight/bias: (C,). mode in {'norm', 'denorm'}."""
    assert mode in ("norm", "denorm")
    B, T, C = x.shape
    assert T >= 2, "RevIN needs T >= 2 (torch.std uses Bessel correction)"

    if weight is None:
        weight = jnp.ones((C,), jnp.float32)
    if bias is None:
        bias = jnp.zeros((C,), jnp.float32)

    itemsize = jnp.dtype(x.dtype).itemsize
    vmem_limit = _vmem_limit_bytes()
    block_budget = _block_budget_bytes(vmem_limit, itemsize)

    kern = _norm_kernel if mode == "norm" else _denorm_kernel

    if C % _LANE == 0:
        # ---------- Layout A: channels on lanes; reduce over T (sublanes). ----
        tc = _choose_channel_tile(T, C, itemsize, block_budget)
        row_bytes = T * tc * itemsize
        # TODO(synk): two-pass / Welford T-tiled variant for T so long that a
        # single (1, T, 128) row plus f32 intermediates exceeds VMEM.
        assert row_bytes <= block_budget, "RevIN: T too long for single-pass tile"
        cap = block_budget // row_bytes
        if C // tc == 1 and B >= 2:
            # Keep >= 2 grid programs so both v7x TensorCores get work.
            cap = min(cap, max(1, B // 2))
        bb = _largest_divisor_leq(B, cap)
        grid = (C // tc, B // bb)   # w/b block index constant over the fast axis

        w3 = jnp.asarray(weight, jnp.float32).reshape(1, 1, C)
        b3 = jnp.asarray(bias, jnp.float32).reshape(1, 1, C)

        x_spec = pl.BlockSpec((bb, T, tc), lambda ci, bi: (bi, 0, ci))
        wb_spec = pl.BlockSpec((1, 1, tc), lambda ci, bi: (0, 0, ci))

        kern = functools.partial(kern, seq_len=T, eps=eps, affine=affine,
                                 reduce_axis=1)
        return pl.pallas_call(
            kern,
            out_shape=jax.ShapeDtypeStruct((B, T, C), x.dtype),
            grid_spec=pltpu.PrefetchScalarGridSpec(
                num_scalar_prefetch=0,
                grid=grid,
                in_specs=[x_spec, wb_spec, wb_spec],
                out_specs=x_spec,
            ),
            compiler_params=pltpu.CompilerParams(
                dimension_semantics=("parallel", "parallel"),
                vmem_limit_bytes=vmem_limit,
            ),
        )(x, w3, b3)

    # ---------- Layout B: small / non-128-aligned C (typical RevIN). ----------
    # Lane-dense repack: run the kernel on x^T = (B, C, T) so the stored last
    # dim is T (lane-dense for typical sequence lengths) instead of C (< 128
    # -> masked partial stores and lane-sparse DMA rows). The relayout is done
    # by XLA in the wrapper and undone on the way out.
    # TODO(synk): fuse the relayout into the kernel (in-VMEM transpose) to
    # avoid the extra HBM round-trips of the wrapper transposes.
    xT = jnp.transpose(x, (0, 2, 1))                       # (B, C, T)
    row_bytes = C * T * itemsize
    # TODO(synk): two-pass / Welford T-tiled variant for extremely long T.
    assert row_bytes <= block_budget, "RevIN: T too long for single-pass tile"
    cap = block_budget // row_bytes
    if B >= 2:
        cap = min(cap, max(1, B // 2))    # >= 2 programs for v7x megacore
    bb = _largest_divisor_leq(B, cap)
    grid = (B // bb,)

    w3 = jnp.asarray(weight, jnp.float32).reshape(1, C, 1)
    b3 = jnp.asarray(bias, jnp.float32).reshape(1, C, 1)

    x_spec = pl.BlockSpec((bb, C, T), lambda bi: (bi, 0, 0))
    wb_spec = pl.BlockSpec((1, C, 1), lambda bi: (0, 0, 0))

    kern = functools.partial(kern, seq_len=T, eps=eps, affine=affine,
                             reduce_axis=2)
    yT = pl.pallas_call(
        kern,
        out_shape=jax.ShapeDtypeStruct((B, C, T), x.dtype),
        grid_spec=pltpu.PrefetchScalarGridSpec(
            num_scalar_prefetch=0,
            grid=grid,
            in_specs=[x_spec, wb_spec, wb_spec],
            out_specs=x_spec,
        ),
        compiler_params=pltpu.CompilerParams(
            dimension_semantics=("parallel",),
            vmem_limit_bytes=vmem_limit,
        ),
    )(xT, w3, b3)
    return jnp.transpose(yT, (0, 2, 1))


def _revin_ref(x, weight, bias, mode, eps=EPS, affine=True):
    # Pure-JAX reference mirroring the PyTorch module.
    x = x.astype(jnp.float32)
    if mode == "norm":
        mean = jnp.mean(x, axis=1, keepdims=True)
        std = jnp.std(x, axis=1, keepdims=True, ddof=1)
        y = (x - mean) / (std + eps)
        if affine:
            y = y * weight + bias
        return y
    else:
        if affine:
            x = (x - bias) / (weight + eps ** 2)
        mean = jnp.mean(x, axis=1, keepdims=True)
        std = jnp.std(x, axis=1, keepdims=True, ddof=1)
        return x * std + mean


def _run_case(B, T, C, key):
    kx, _ = jax.random.split(key)
    x = jax.random.normal(kx, (B, T, C), dtype=jnp.float32) * 3.0 + 1.5
    # Deterministic parameter init, same as nn.Parameter(torch.ones/zeros(C))
    # (perturbed slightly so the affine path is actually exercised).
    w = jnp.ones((C,), jnp.float32) + 0.1 * jnp.arange(C, dtype=jnp.float32)
    b = jnp.zeros((C,), jnp.float32) + 0.05 * jnp.arange(C, dtype=jnp.float32)

    y_norm = jax.block_until_ready(revin(x, w, b, "norm"))
    y_denorm = jax.block_until_ready(revin(y_norm, w, b, "denorm"))

    ref_norm = _revin_ref(x, w, b, "norm")
    ref_denorm = _revin_ref(y_norm, w, b, "denorm")

    assert jnp.allclose(y_norm, ref_norm, atol=1e-4, rtol=1e-4), "norm mismatch"
    assert jnp.allclose(y_denorm, ref_denorm, atol=1e-4, rtol=1e-4), "denorm mismatch"


if __name__ == "__main__":
    key = jax.random.PRNGKey(0)
    k1, k2 = jax.random.split(key)
    # Small / non-128-aligned C -> lane-dense (B, C, T) path.
    _run_case(B=2, T=16, C=8, key=k1)
    # 128-aligned C -> channels-on-lanes path.
    _run_case(B=2, T=16, C=128, key=k2)
    print("KERNEL_OK")
</pallas_src>

<mosaic_0001>
module attributes {stable_mosaic.version = 11 : i64} {
  func.func @_norm_kernel(%arg0: i32, %arg1: memref<1x8x16xf32, #tpu.memory_space<vmem>>, %arg2: memref<1x8x1xf32, #tpu.memory_space<vmem>>, %arg3: memref<1x8x1xf32, #tpu.memory_space<vmem>>, %arg4: memref<1x8x16xf32, #tpu.memory_space<vmem>>) attributes {dimension_semantics = [#tpu.dimension_semantics<parallel>], iteration_bounds = array<i64: 2>, scalar_prefetch = 0 : i64, scratch_operands = 0 : i64, tpu.core_type = #tpu.core_type<tc>, window_params = [{transform_indices = @transform_0, window_bounds = array<i64: 1, 8, 16>}, {pipeline_mode = #tpu.pipeline_mode<synchronous>, transform_indices = @transform_1, window_bounds = array<i64: 1, 8, 1>}, {pipeline_mode = #tpu.pipeline_mode<synchronous>, transform_indices = @transform_2, window_bounds = array<i64: 1, 8, 1>}, {transform_indices = @transform_3, window_bounds = array<i64: 1, 8, 16>}]} {
    %c0 = arith.constant 0 : index
    %c0_0 = arith.constant 0 : index
    %c0_1 = arith.constant 0 : index
    %0 = vector.load %arg1[%c0, %c0_0, %c0_1] : memref<1x8x16xf32, #tpu.memory_space<vmem>>, vector<1x8x16xf32>
    %cst = arith.constant dense<0.000000e+00> : vector<1x8xf32>
    %1 = vector.multi_reduction <add>, %0, %cst [2] : vector<1x8x16xf32> to vector<1x8xf32>
    %2 = vector.shape_cast %1 : vector<1x8xf32> to vector<1x8x1xf32>
    %cst_2 = arith.constant 1.600000e+01 : f32
    %3 = vector.broadcast %cst_2 : f32 to vector<1x8x1xf32>
    %4 = arith.divf %2, %3 : vector<1x8x1xf32>
    %5 = vector.broadcast %4 : vector<1x8x1xf32> to vector<1x8x16xf32>
    %6 = arith.subf %0, %5 : vector<1x8x16xf32>
    %7 = arith.mulf %6, %6 : vector<1x8x16xf32>
    %cst_3 = arith.constant dense<0.000000e+00> : vector<1x8xf32>
    %8 = vector.multi_reduction <add>, %7, %cst_3 [2] : vector<1x8x16xf32> to vector<1x8xf32>
    %9 = vector.shape_cast %8 : vector<1x8xf32> to vector<1x8x1xf32>
    %cst_4 = arith.constant 0.0666666701 : f32
    %10 = vector.broadcast %cst_4 : f32 to vector<1x8x1xf32>
    %11 = arith.mulf %9, %10 : vector<1x8x1xf32>
    %12 = math.sqrt %11 : vector<1x8x1xf32>
    %cst_5 = arith.constant 9.99999974E-6 : f32
    %13 = vector.broadcast %cst_5 : f32 to vector<1x8x1xf32>
    %14 = arith.addf %12, %13 : vector<1x8x1xf32>
    %15 = tpu.reciprocal %14 : vector<1x8x1xf32> -> vector<1x8x1xf32>
    %c0_6 = arith.constant 0 : index
    %c0_7 = arith.constant 0 : index
    %c0_8 = arith.constant 0 : index
    %16 = vector.load %arg2[%c0_6, %c0_7, %c0_8] : memref<1x8x1xf32, #tpu.memory_space<vmem>>, vector<1x8x1xf32>
    %c0_9 = arith.constant 0 : index
    %c0_10 = arith.constant 0 : index
    %c0_11 = arith.constant 0 : index
    %17 = vector.load %arg3[%c0_9, %c0_10, %c0_11] : memref<1x8x1xf32, #tpu.memory_space<vmem>>, vector<1x8x1xf32>
    %18 = arith.mulf %15, %16 : vector<1x8x1xf32>
    %19 = vector.broadcast %18 : vector<1x8x1xf32> to vector<1x8x16xf32>
    %20 = arith.mulf %6, %19 : vector<1x8x16xf32>
    %21 = vector.broadcast %17 : vector<1x8x1xf32> to vector<1x8x16xf32>
    %22 = arith.addf %20, %21 : vector<1x8x16xf32>
    %c0_12 = arith.constant 0 : index
    %c0_13 = arith.constant 0 : index
    %c0_14 = arith.constant 0 : index
    %23 = vector.load %arg4[%c0_12, %c0_13, %c0_14] : memref<1x8x16xf32, #tpu.memory_space<vmem>>, vector<1x8x16xf32>
    tpu.vector_store %arg4[%c0_12, %c0_13, %c0_14], %22 {strides = array<i32>} : memref<1x8x16xf32, #tpu.memory_space<vmem>>, vector<1x8x16xf32>,
    return
  }
  func.func @transform_0(%arg0: i32) -> (i32, i32, i32) {
    %c0_i32 = arith.constant 0 : i32
    %c0_i32_0 = arith.constant 0 : i32
    %c0_i32_1 = arith.constant 0 : i32
    return %arg0, %c0_i32, %c0_i32_0 : i32, i32, i32
  }
  func.func @transform_1(%arg0: i32) -> (i32, i32, i32) {
    %c0_i32 = arith.constant 0 : i32
    %c0_i32_0 = arith.constant 0 : i32
    %c0_i32_1 = arith.constant 0 : i32
    %c0_i32_2 = arith.constant 0 : i32
    return %c0_i32, %c0_i32_0, %c0_i32_1 : i32, i32, i32
  }
  func.func @transform_2(%arg0: i32) -> (i32, i32, i32) {
    %c0_i32 = arith.constant 0 : i32
    %c0_i32_0 = arith.constant 0 : i32
    %c0_i32_1 = arith.constant 0 : i32
    %c0_i32_2 = arith.constant 0 : i32
    return %c0_i32, %c0_i32_0, %c0_i32_1 : i32, i32, i32
  }
  func.func @transform_3(%arg0: i32) -> (i32, i32, i32) {
    %c0_i32 = arith.constant 0 : i32
    %c0_i32_0 = arith.constant 0 : i32
    %c0_i32_1 = arith.constant 0 : i32
    return %arg0, %c0_i32, %c0_i32_0 : i32, i32, i32
  }
}

</mosaic_0001>

<bundles_post_ra>
// kernel: tpu_custom_call.1
= control target key start
LH: loop header
LB: loop body
LE: loop exit
PB: predicated region body
PF: predicated region fallthrough
CT: control target
= control target key end

     0   :  { %8 = vsyncpa [#allocation3], 0  ;;  %s528_s0 = inlined_call_operand.vmem [shape: f32[2,8,16], index: 0, kind: input, shape index: {}]   ;;  %s529_s1 = inlined_call_operand.vmem [shape: f32[1,8,1], index: 1, kind: input, shape index: {}]   ;;  %s530_s2 = inlined_call_operand.vmem [shape: f32[1,8,1], index: 2, kind: input, shape index: {}]   ;;  %s531_s3 = inlined_call_operand.hbm [shape: f32[2,8,16], index: 3, kind: output, shape index: {}]  }
   0x1   :  { %10 = vsyncpa [#allocation3 + $0x1], 0  ;;  %s419_s12 = smov 0   ;;  %s421_s13 = smov 0  }
   0x2   :  { %s423_s14 = smov 0   ;;  %s425_s15 = smov 0  }
   0x3 LB: > { %s440_s16 = sadd.s32 4294967295, %s395_s15   ;;  %s277_s17 = sadd.s32 4294967294, %s395_s15   ;;  %s395_s15 = sphi %s425_s15, %s537_s15   ;;  %s391_s14 = sphi %s423_s14, %s536_s14   ;;  %s387_s13 = sphi %s421_s13, %s535_s13   ;;  %s383_s12 = sphi %s419_s12, %s534_s12  }
   0x4   : > { %s444_s18 = sadd.s32 1, %s395_s15   ;;  %s91_s19 = sadd.s32 1, %s391_s14 }
   0x5   : > { %s88_s20 = ssub.s32 %s395_s15, %s444_s18  ;;  %p101_p0 = scmp.ne.s32.totalorder %s391_s14, %s387_s13 }
   0x6   : > { %p89_p1 = scmp.eq.s32.totalorder %s88_s20, 0  ;;  %p102_p2 = scmp.eq.s32.totalorder %s440_s16, 1 }
   0x7   : > { %p107_p3 = scmp.ne.s32.totalorder %s387_s13, %s383_s12  ;;  %p108_p4 = scmp.eq.s32.totalorder %s277_s17, 1 }
   0x8   : > { %s455_s21 = scalar_select %p89_p1, %s391_s14, %s91_s19  }
   0x9   : > { %p457_p5 = por %p102_p2, %p101_p0  ;;  %p461_p6 = por %p108_p4, %p107_p3 }
   0xa   : > { %p280_p7 = scmp.ge.s32.totalorder %s395_s15, 1  ;;  %p139_p8 = scmp.lt.s32.totalorder %s395_s15, 3 }
   0xc   : > { %p140_p9 = pnand %p280_p7, %p139_p8 }
   0xd   : > { %p162_p10 = scmp.lt.s32.totalorder (!%p140_p9), %s440_s16, 1  ;;  %vm167_vm0 = vcmask (!%p140_p9), 130048   ;;  %v397_v7 = vmov (!%p140_p9), 0   ;;  %v188_v16 = vld [vmem:[%s529_s1] sm:$0xff] (!%p140_p9)  ;;  %s159_s6 = sand.u32 (!%p140_p9), 1, %s387_s13  }
   0xe   : > { %143 = sbr.rel (%p140_p9) target bundleno = 498 (0x1f2), region = 32  ;;  %327 = vset.pattern.permute.xlu1 (!%p140_p9), %v397_v7  ;;  %328 = vset.pattern.permute.xlu0 (!%p140_p9), %v397_v7  ;;  %v189_v19 = vld [vmem:[%s530_s2] sm:$0xff] (!%p140_p9)  ;;  %s281_s7 = sshll.u32 (!%p140_p9), %s159_s6, 3 }
   0xf   : > { %s284_s8 = sshll.u32 (!%p140_p9), %s440_s16, 7  ;;  %s161_s9 = scalar_lea.vmem (!%p140_p9), [#allocation2], %s281_s7 }
  0x10   : > { %s218_s10 = sshll.u32 (!%p140_p9), %s161_s9, 4  ;;  %s485_s19 = scalar_lea.hbm (!%p140_p9), %s531_s3, %s284_s8  ;;  %s487_s10 = int_to_ptr.vmem [resolvable:$true] %s218_s10 }
  0x11   : > { %s205_s20 = scalar_lea.sflag (!%p140_p9), [#allocation3], %s159_s6 }
  0x15   : > { %s163_s24 = scalar_select %p162_p10, %s440_s16, 1 }
  0x16   : > { %s398_s16 = smov [#allocation2]  }
  0x17   : > { %s282_s25 = sshll.u32 %s163_s24, 3  ;;  %s333_s24 = scalar_lea.vmem %s487_s10, 128 }
  0x18   : > { %s165_s28 = scalar_lea.vmem %s528_s0, %s282_s25  ;;  %p334_p11 = scmp.ne.s32.totalorder %s487_s10, %s333_s24 }
  0x19   : > { %v166_v0 = vld [vmem:[%s165_s28] sm:$0xff]  ;;  %s337_s25 = sshll.u32 %s398_s16, 4  ;;  %s338_s25 = int_to_ptr.vmem [resolvable:$false] %s337_s25 }
  0x1a   : > { %v168_v1 = vsel %vm167_vm0, %v166_v0, 0.0  ;;  %p335_p12 = pnand %p334_p11, %p457_p5  ;;  %s339_s26 = scalar_lea.vmem %s338_s25, 256 }
  0x1b   : > { %169 = vadd.xlane.f32.xlu0 %v168_v1  ;;  %p340_p0 = scmp.lt.s32.totalorder %s487_s10, %s338_s25  ;;  %p341_p1 = scmp.lt.s32.totalorder %s339_s26, %s333_s24 }
  0x1c   : > { %p336_p13 = pneg %p335_p12 }
  0x1d   : > { %p342_p2 = por %p341_p1, %p340_p0 }
  0x1f   : > { %p343_p3 = pnand %p342_p2, %p336_p13 }
  0xa8   : > { %v170_v2 = vpop.xlane.xlu0 %169 }
  0xa9   : > { %v172_v3 = vmul.f32 0.0625, %v170_v2 }
  0xab   : > { %v173_v4 = vsub.f32 %v166_v0, %v172_v3 }
  0xad   : > { %v174_v5 = vmul.f32 %v173_v4, %v173_v4 }
  0xaf   : > { %v175_v6 = vsel %vm167_vm0, %v174_v5, 0.0 }
  0xb0   : > { %176 = vadd.xlane.f32.xlu0 %v175_v6 }
 0x13d   : > { %v177_v8 = vpop.xlane.xlu0 %176 }
 0x13e   : > { %v178_v9 = vmul.f32 0.06666667, %v177_v8 }
 0x140   : > { %329 = vrsqrt.f32 %v178_v9  ;;  %vm181_vm1 = vcmp.eq.f32.partialorder %v178_v9, inf  ;;  %v184_v12 = vand.u32 2147483648, %v178_v9  ;;  %vm183_vm2 = vcmp.eq.f32.partialorder %v178_v9, 0.0 }
 0x14a   : > { %v330_v10 = vpop.eup %329 }
 0x14b   : > { %v180_v11 = vmul.f32 %v330_v10, %v178_v9 }
 0x14d   : > { %v182_v13 = vsel %vm181_vm1, %v178_v9, %v180_v11 }
 0x14e   : > { %v185_v14 = vsel %vm183_vm2, %v184_v12, %v182_v13 }
 0x14f   : > { %v186_v15 = vadd.f32 1e-05, %v185_v14 }
 0x151   : > { %331 = vrcp.f32 %v186_v15 }
 0x15b   : > { %v332_v17 = vpop.eup %331 }
 0x15c   : > { %v190_v18 = vmul.f32 %v332_v17, %v188_v16 }
 0x15e   : > { %193 = vperm.xlu1 %327, %v190_v18  }
 0x162   : > { %199 = vperm.xlu1 %327, %v189_v19  }
 0x1dd   : > { %v194_v20 = vpop.permute.xlu1 %193 }
 0x1de   : > { %v196_v21 = vmul.f32 %v194_v20, %v173_v4 }
 0x1e1   : > { %v200_v22 = vpop.permute.xlu1 %199 }
 0x1e2   : > { %v202_v23 = vadd.f32 %v200_v22, %v196_v21 }
 0x1e4   : > { %203 = vst.msk [vmem:[%s161_s9] sm:$0xff] %vm167_vm0, %v202_v23 }
 0x1e5   : > { %346 = shalt.err (!%p343_p3)
}
 0x1e6   : > { %s347_s27 = scalar_lea.hbm %s485_s19, 128  ;;  %s351_s30 = scalar_lea.hbm %s531_s3, 256 }
 0x1e7   : > { %p348_p4 = scmp.ne.s32.totalorder %s485_s19, %s347_s27  ;;  %p352_p9 = scmp.lt.u32.totalorder %s485_s19, %s531_s3 }
 0x1e8   : > { %p353_p10 = scmp.lt.u32.totalorder %s351_s30, %s347_s27  ;;  %p355_p12 = scmp.lt.u32.totalorder %s347_s27, %s485_s19 }
 0x1e9   : > { %p349_p7 = pnand %p348_p4, %p457_p5 }
 0x1ea   : > { %p354_p11 = por %p353_p10, %p352_p9 }
 0x1eb   : > { %p350_p8 = pneg %p349_p7 }
 0x1ec   : > { %p356_p13 = por %p355_p12, %p354_p11 }
 0x1ee   : > { %p357_p0 = pnand %p356_p13, %p350_p8 }
 0x1f0   : > { %360 = shalt.err (!%p357_p0)
}
 0x1f1   : > { %287 = dma.vmem_to_hbm [thread:$0]  (%p457_p5), %s487_s10, 128, %s485_s19, %s205_s20  }
 0x1f2 PF: > { %p293_p1 = scmp.ge.s32.totalorder %s395_s15, 2  ;;  %s230_s6 = sand.u32 1, %s383_s12  }
 0x1f3   : > { %s231_s7 = scalar_lea.sflag [#allocation3], %s230_s6 }
 0x1f4   : > { %p290_p2 = pnand %p293_p1, %p461_p6 }
 0x1f6   : > { %378 = dma.done.wait (!%p290_p2), %s231_s7, 128  }
 0x1f7   : > { %380 = vsyncadd (!%p290_p2), %s231_s7, 4294967168  ;;  %p13_p3 = scmp.ge.s32.totalorder %s444_s18, 4   ;;  %s534_s12 = smov %s387_s13 }
 0x1f8   : > { %s535_s13 = smov %s391_s14  ;;  %s536_s14 = smov %s455_s21 }
 0x1f9   : > { %s537_s15 = smov %s444_s18  ;;  %15 = sbr.rel (!%p13_p3) target bundleno = 3 (0x3), region = 67 }
 0x200   :  { %236 = vsyncpa [#allocation3], 1 }
 0x201   :  { %238 = vsyncpa [#allocation3 + $0x1], 1 }

</bundles_post_ra>
